<compile_context>
chip_gen: v7x
topology: tpu7x:2x2x1
jax: 0.10.0
libtpu: 0.0.40
codegen_flags: <defaults>
</compile_context>

<pallas_src>
import functools
import math

import jax
import jax.numpy as jnp
from jax import lax
from jax.experimental import pallas as pl
from jax.experimental.pallas import tpu as pltpu

NUM_QUERY = 10          # the module's learned query has 10 tokens
NUM_HEADS = 2           # module default


def _round_up(x, m):
    return (x + m - 1) // m * m


# --------------------------- shared finalize helper ---------------------------
def _finalize(o_all, wp_ref, bp_ref, o_ref, *, nq, nqp, num_heads, hd, mxu_dtype):
    """Extract per-head diagonal blocks of o_all, project, store (runs once)."""
    att = jnp.concatenate(
        [o_all[h * nqp:h * nqp + nq, h * hd:(h + 1) * hd]
         for h in range(num_heads)], axis=-1)                       # (NQ, C)
    out = jnp.dot(att.astype(mxu_dtype), wp_ref[...],
                  preferred_element_type=jnp.float32) + bp_ref[...]
    o_ref[...] = out.astype(o_ref.dtype)


# --------------------------- single-tile kernel (grid=(B,)) -------------------
def _single_tile_kernel(qk_ref, wv_ref, wp_ref, bp_ref, x_ref, o_ref, *,
                        nq, nqp, num_heads, hd, n_valid, mxu_dtype):
    """Whole (padded) key sequence in one tile: plain softmax, no m/l/acc."""
    x = x_ref[...].astype(mxu_dtype)                                # (n_pad, C)
    n_pad = x.shape[0]

    # One MXU matmul produces every head's scores (block-diagonal qk, scale
    # and k-projection folded in); last dims contracted -> no explicit .T.
    s = lax.dot_general(qk_ref[...], x, (((1,), (1,)), ((), ())),
                        preferred_element_type=jnp.float32)         # (H*NQP, n_pad)

    if n_valid < n_pad:                                             # static
        col = lax.broadcasted_iota(jnp.int32, (1, n_pad), 1)
        s = s + jnp.where(col < n_valid, 0.0, -jnp.inf)

    m = jnp.max(s, axis=-1, keepdims=True)
    p = jnp.exp(s - m)                                              # f32 softmax
    l = jnp.sum(p, axis=-1, keepdims=True)

    v = jnp.dot(x, wv_ref[...], preferred_element_type=jnp.float32)  # (n_pad, C)
    o_all = jnp.dot(p.astype(mxu_dtype), v.astype(mxu_dtype),
                    preferred_element_type=jnp.float32)             # (H*NQP, C)
    o_all = o_all * pl.reciprocal(l, approx=False)

    _finalize(o_all, wp_ref, bp_ref, o_ref, nq=nq, nqp=nqp,
              num_heads=num_heads, hd=hd, mxu_dtype=mxu_dtype)


# --------------------------- tiled kernel (grid=(B, T)) -----------------------
def _tiled_kernel(qk_ref, wv_ref, wp_ref, bp_ref, x_ref, o_ref,
                  m_ref, l_ref, acc_ref, *,
                  nq, nqp, num_heads, hd, n_valid, n_padded, tile_n, mxu_dtype):
    """Flash-style online softmax over large key tiles."""
    t = pl.program_id(1)
    last = pl.num_programs(1) - 1

    @pl.when(t == 0)
    def _init():
        m_ref[...] = jnp.full_like(m_ref, -jnp.inf)
        l_ref[...] = jnp.zeros_like(l_ref)
        acc_ref[...] = jnp.zeros_like(acc_ref)

    x = x_ref[...].astype(mxu_dtype)                                # (tile_n, C)
    s = lax.dot_general(qk_ref[...], x, (((1,), (1,)), ((), ())),
                        preferred_element_type=jnp.float32)         # (H*NQP, tile_n)
    v = jnp.dot(x, wv_ref[...], preferred_element_type=jnp.float32)

    def update(scores):
        m_prev = m_ref[...]
        m_new = jnp.maximum(m_prev, jnp.max(scores, axis=-1, keepdims=True))
        alpha = jnp.exp(m_prev - m_new)
        p = jnp.exp(scores - m_new)                                 # f32 softmax
        l_ref[...] = alpha * l_ref[...] + jnp.sum(p, axis=-1, keepdims=True)
        acc_ref[...] = alpha * acc_ref[...] + jnp.dot(
            p.astype(mxu_dtype), v.astype(mxu_dtype),
            preferred_element_type=jnp.float32)
        m_ref[...] = m_new

    if n_padded > n_valid:
        # Padding only exists on the last tile -> interior tiles pay no mask.
        @pl.when(t != last)
        def _steady():
            update(s)

        @pl.when(t == last)
        def _tail():
            col = t * tile_n + lax.broadcasted_iota(jnp.int32, (1, tile_n), 1)
            update(s + jnp.where(col < n_valid, 0.0, -jnp.inf))
    else:
        update(s)

    @pl.when(t == last)
    def _fin():
        o_all = acc_ref[...] * pl.reciprocal(l_ref[...], approx=False)
        _finalize(o_all, wp_ref, bp_ref, o_ref, nq=nq, nqp=nqp,
                  num_heads=num_heads, hd=hd, mxu_dtype=mxu_dtype)


# --------------------------- wrapper ------------------------------------------
def _choose_tile(n, c, itemsize, target_tile_bytes=2 << 20):
    """Largest key tile keeping the x block ~2 MiB (VMEM-safe on v7x too)."""
    rows_budget = max(256, target_tile_bytes // max(1, c * itemsize))
    n8 = _round_up(n, 8)
    if n8 <= rows_budget:
        return n8, 1                              # whole sequence per grid step
    tile = max(256, rows_budget // 128 * 128)
    return tile, pl.cdiv(n, tile)


def query_attention_forward(x, params, *, num_heads=NUM_HEADS,
                            mxu_dtype=jnp.float32, tile_n_override=None):
    """x: (B, N, C) -> (B, NUM_QUERY, C); matches query_Attention.forward."""
    B, N, C = x.shape
    assert C % num_heads == 0
    hd = C // num_heads
    scale = hd ** (-0.5)
    q = params["q"].astype(jnp.float32)                       # (NQ, C)
    NQ = q.shape[0]
    NQP = _round_up(NQ, 8)                                    # pad queries 10 -> 16
    HNQP = num_heads * NQP

    # Block-diagonal query matrix with scale and k-projection folded in:
    #   qk[h*NQP + i, :] = scale * q[i, head_h_cols] @ wk[:, head_h_cols].T
    # so one matmul qk @ x^T yields every head's scores with no per-head
    # lane slicing inside the kernel.
    q_bd = jnp.zeros((HNQP, C), jnp.float32)
    for h in range(num_heads):
        q_bd = q_bd.at[h * NQP:h * NQP + NQ, h * hd:(h + 1) * hd].set(
            q[:, h * hd:(h + 1) * hd])
    qk_w = (scale * q_bd) @ params["wk"].astype(jnp.float32).T       # (HNQP, C)

    wv = params["wv"].astype(jnp.float32)
    wp = params["wp"].astype(jnp.float32)
    bp = params["bp"].reshape(1, C).astype(jnp.float32)

    # MXU operands in mxu_dtype (bf16 halves resident weight VMEM); softmax /
    # accumulator math stays f32 (v5e VPU/EUP have no bf16 path).
    qk_w = qk_w.astype(mxu_dtype)
    wv = wv.astype(mxu_dtype)
    wp = wp.astype(mxu_dtype)

    # ---- key tiling: biggest tile that fits the VMEM budget ------------------
    if tile_n_override is not None:
        tile_n = _round_up(int(tile_n_override), 8)
        num_tiles = pl.cdiv(N, tile_n)
    else:
        tile_n, num_tiles = _choose_tile(N, C, jnp.dtype(x.dtype).itemsize)
    n_padded = tile_n * num_tiles
    x_p = jnp.pad(x, ((0, 0), (0, n_padded - N), (0, 0))) if n_padded != N else x

    # ---- VMEM budget / compiler params ---------------------------------------
    x_item = jnp.dtype(x.dtype).itemsize
    w_item = jnp.dtype(mxu_dtype).itemsize
    lanes = max(C, 128)
    tmp_rows = 2 * HNQP + 2 * C                    # s, p, v, x-cast temporaries
    need = (2 * tile_n * C * x_item                               # x, double-buffered
            + 2 * ((HNQP + 2 * C) * C * w_item + C * 4)           # weights
            + 2 * NQ * lanes * 4                                  # output block
            + (2 * 128 + lanes) * HNQP * 4                        # m / l / acc
            + tmp_rows * tile_n * 4)                              # temporaries
    vmem_limit = int(min(max(need + (8 << 20), 16 << 20), 48 << 20))

    cost = pl.CostEstimate(
        flops=2 * B * (2 * HNQP * n_padded * C + n_padded * C * C + NQ * C * C),
        transcendentals=B * HNQP * n_padded,
        bytes_accessed=(x_p.size * x_item
                        + (HNQP + 2 * C) * C * w_item + C * 4
                        + B * NQ * C * x_item),
    )

    weight_shapes = [(HNQP, C), (C, C), (C, C), (1, C)]
    common = dict(nq=NQ, nqp=NQP, num_heads=num_heads, hd=hd,
                  n_valid=N, mxu_dtype=mxu_dtype)

    if num_tiles == 1:
        kernel = functools.partial(_single_tile_kernel, **common)
        grid = (B,)
        w_specs = [pl.BlockSpec(s, lambda b: (0, 0)) for s in weight_shapes]
        x_spec = pl.BlockSpec((pl.Squeezed(), tile_n, C), lambda b: (b, 0, 0))
        o_spec = pl.BlockSpec((pl.Squeezed(), NQ, C), lambda b: (b, 0, 0))
        scratch = []
        dims = ("parallel",)
    else:
        kernel = functools.partial(_tiled_kernel, n_padded=n_padded,
                                   tile_n=tile_n, **common)
        grid = (B, num_tiles)
        w_specs = [pl.BlockSpec(s, lambda b, t: (0, 0)) for s in weight_shapes]
        x_spec = pl.BlockSpec((pl.Squeezed(), tile_n, C), lambda b, t: (b, t, 0))
        o_spec = pl.BlockSpec((pl.Squeezed(), NQ, C), lambda b, t: (b, 0, 0))
        scratch = [pltpu.VMEM((HNQP, 1), jnp.float32),    # running max m
                   pltpu.VMEM((HNQP, 1), jnp.float32),    # running sum l
                   pltpu.VMEM((HNQP, C), jnp.float32)]    # running acc
        dims = ("parallel", "arbitrary")

    return pl.pallas_call(
        kernel,
        out_shape=jax.ShapeDtypeStruct((B, NQ, C), x.dtype),
        grid=grid,
        in_specs=w_specs + [x_spec],
        out_specs=o_spec,
        scratch_shapes=scratch,
        compiler_params=pltpu.CompilerParams(
            dimension_semantics=dims, vmem_limit_bytes=vmem_limit),
        cost_estimate=cost,
    )(qk_w, wv, wp, bp, x_p)


# --------------------------- pure-JAX reference --------------------------------
def query_attention_reference(x, params, *, num_heads=NUM_HEADS):
    B, N, C = x.shape
    hd = C // num_heads
    scale = hd ** (-0.5)
    NQ = params["q"].shape[0]

    k = x @ params["wk"]
    v = x @ params["wv"]
    q = jnp.broadcast_to(params["q"][None], (B, NQ, C))

    qh = q.reshape(B, NQ, num_heads, hd).transpose(0, 2, 1, 3)
    kh = k.reshape(B, N, num_heads, hd).transpose(0, 2, 1, 3)
    vh = v.reshape(B, N, num_heads, hd).transpose(0, 2, 1, 3)

    attn = jnp.einsum("bhqd,bhkd->bhqk", qh, kh) * scale
    attn = jax.nn.softmax(attn, axis=-1)
    out = jnp.einsum("bhqk,bhkd->bhqd", attn, vh)
    out = out.transpose(0, 2, 1, 3).reshape(B, NQ, C)
    return out @ params["wp"] + params["bp"][None, None, :]


# --------------------------- parameter init ------------------------------------
def init_params(key, dim, num_queries=NUM_QUERY):
    k1, k2, k3 = jax.random.split(key, 3)
    s = 1.0 / math.sqrt(dim)
    return {
        # module init: nn.Parameter(torch.ones((1, 10, dim)))
        "q": jnp.ones((num_queries, dim), jnp.float32),
        # k/v: Linear(dim, dim, bias=False), stored as (in, out) = W^T
        "wk": s * jax.random.normal(k1, (dim, dim), jnp.float32),
        "wv": s * jax.random.normal(k2, (dim, dim), jnp.float32),
        # proj: Linear(dim, dim) with bias
        "wp": s * jax.random.normal(k3, (dim, dim), jnp.float32),
        "bp": jnp.zeros((dim,), jnp.float32),
    }


# --------------------------- main ------------------------------------------------
if __name__ == "__main__":
    key = jax.random.PRNGKey(0)
    pkey, xkey = jax.random.split(key)

    DIM = 32                         # channel dim (head_dim = 16, num_heads = 2)
    B, N = 2, 200                    # N not a multiple of the forced tile below

    params = init_params(pkey, DIM)
    x = jax.random.normal(xkey, (B, N, DIM), jnp.float32)

    ref = jax.block_until_ready(query_attention_reference(x, params))

    # 1) default: whole sequence per batch in one tile (no online softmax)
    out_single = jax.block_until_ready(query_attention_forward(x, params))
    # 2) forced multi-tile path: exercises online softmax + last-tile-only mask
    out_tiled = jax.block_until_ready(
        query_attention_forward(x, params, tile_n_override=64))
    # 3) bf16 MXU operands (f32 accumulation / softmax), default tiling
    out_bf16 = jax.block_until_ready(
        query_attention_forward(x, params, mxu_dtype=jnp.bfloat16))

    for name, out, tol in (("single", out_single, 5e-5),
                           ("tiled", out_tiled, 5e-5),
                           ("bf16", out_bf16, 5e-2)):
        if not jnp.allclose(out, ref, atol=tol, rtol=tol):
            err = float(jnp.max(jnp.abs(out - ref)))
            raise AssertionError(
                f"Pallas query_Attention mismatch ({name}), max err {err}")

    print("KERNEL_OK")
</pallas_src>

<mosaic_0001>
module attributes {stable_mosaic.version = 11 : i64} {
  func.func @_single_tile_kernel(%arg0: i32, %arg1: memref<32x32xf32, #tpu.memory_space<vmem>>, %arg2: memref<32x32xf32, #tpu.memory_space<vmem>>, %arg3: memref<32x32xf32, #tpu.memory_space<vmem>>, %arg4: memref<1x32xf32, #tpu.memory_space<vmem>>, %arg5: memref<1x200x32xf32, #tpu.memory_space<vmem>>, %arg6: memref<1x10x32xf32, #tpu.memory_space<vmem>>) attributes {dimension_semantics = [#tpu.dimension_semantics<parallel>], iteration_bounds = array<i64: 2>, scalar_prefetch = 0 : i64, scratch_operands = 0 : i64, tpu.core_type = #tpu.core_type<tc>, window_params = [{pipeline_mode = #tpu.pipeline_mode<synchronous>, transform_indices = @transform_0, window_bounds = array<i64: 32, 32>}, {pipeline_mode = #tpu.pipeline_mode<synchronous>, transform_indices = @transform_1, window_bounds = array<i64: 32, 32>}, {pipeline_mode = #tpu.pipeline_mode<synchronous>, transform_indices = @transform_2, window_bounds = array<i64: 32, 32>}, {pipeline_mode = #tpu.pipeline_mode<synchronous>, transform_indices = @transform_3, window_bounds = array<i64: 1, 32>}, {transform_indices = @transform_4, window_bounds = array<i64: 1, 200, 32>}, {transform_indices = @transform_5, window_bounds = array<i64: 1, 10, 32>}]} {
    %c0 = arith.constant 0 : index
    %c0_0 = arith.constant 0 : index
    %c0_1 = arith.constant 0 : index
    %0 = vector.load %arg5[%c0, %c0_0, %c0_1] : memref<1x200x32xf32, #tpu.memory_space<vmem>>, vector<1x200x32xf32>
    %1 = vector.shape_cast %0 : vector<1x200x32xf32> to vector<200x32xf32>
    %c0_2 = arith.constant 0 : index
    %c0_3 = arith.constant 0 : index
    %2 = vector.load %arg1[%c0_2, %c0_3] : memref<32x32xf32, #tpu.memory_space<vmem>>, vector<32x32xf32>
    %cst = arith.constant dense<0.000000e+00> : vector<32x200xf32>
    %3 = tpu.matmul %2, %1, %cst {dimension_numbers = #tpu.dot_dimension_numbers<[1], [1], [0], [0], [0, 0, 1, 0], [], []>} : vector<32x32xf32>, vector<200x32xf32>, vector<32x200xf32> -> vector<32x200xf32>
    %cst_4 = arith.constant dense<0xFF800000> : vector<32xf32>
    %4 = vector.multi_reduction <maximumf>, %3, %cst_4 [1] : vector<32x200xf32> to vector<32xf32>
    %5 = vector.shape_cast %4 : vector<32xf32> to vector<32x1xf32>
    %6 = vector.broadcast %5 : vector<32x1xf32> to vector<32x200xf32>
    %7 = arith.subf %3, %6 : vector<32x200xf32>
    %8 = math.exp %7 : vector<32x200xf32>
    %cst_5 = arith.constant dense<0.000000e+00> : vector<32xf32>
    %9 = vector.multi_reduction <add>, %8, %cst_5 [1] : vector<32x200xf32> to vector<32xf32>
    %10 = vector.shape_cast %9 : vector<32xf32> to vector<32x1xf32>
    %c0_6 = arith.constant 0 : index
    %c0_7 = arith.constant 0 : index
    %11 = vector.load %arg2[%c0_6, %c0_7] : memref<32x32xf32, #tpu.memory_space<vmem>>, vector<32x32xf32>
    %cst_8 = arith.constant dense<0.000000e+00> : vector<200x32xf32>
    %12 = tpu.matmul %1, %11, %cst_8 {dimension_numbers = #tpu.dot_dimension_numbers<[1], [0], [0], [1], [0, 0, 1, 1], [], []>} : vector<200x32xf32>, vector<32x32xf32>, vector<200x32xf32> -> vector<200x32xf32>
    %cst_9 = arith.constant dense<0.000000e+00> : vector<32x32xf32>
    %13 = tpu.matmul %8, %12, %cst_9 {dimension_numbers = #tpu.dot_dimension_numbers<[1], [0], [0], [1], [0, 0, 1, 1], [], []>} : vector<32x200xf32>, vector<200x32xf32>, vector<32x32xf32> -> vector<32x32xf32>
    %14 = tpu.reciprocal %10 : vector<32x1xf32> -> vector<32x1xf32>
    %15 = vector.broadcast %14 : vector<32x1xf32> to vector<32x32xf32>
    %16 = arith.mulf %13, %15 : vector<32x32xf32>
    %17 = vector.extract_strided_slice %16 {offsets = [0, 0], sizes = [10, 16], strides = [1, 1]} : vector<32x32xf32> to vector<10x16xf32>
    %18 = vector.extract_strided_slice %16 {offsets = [16, 16], sizes = [10, 16], strides = [1, 1]} : vector<32x32xf32> to vector<10x16xf32>
    %19 = tpu.concatenate %17, %18 in 1 : vector<10x16xf32>, vector<10x16xf32> -> vector<10x32xf32>
    %c0_10 = arith.constant 0 : index
    %c0_11 = arith.constant 0 : index
    %20 = vector.load %arg3[%c0_10, %c0_11] : memref<32x32xf32, #tpu.memory_space<vmem>>, vector<32x32xf32>
    %cst_12 = arith.constant dense<0.000000e+00> : vector<10x32xf32>
    %21 = tpu.matmul %19, %20, %cst_12 {dimension_numbers = #tpu.dot_dimension_numbers<[1], [0], [0], [1], [0, 0, 1, 1], [], []>} : vector<10x32xf32>, vector<32x32xf32>, vector<10x32xf32> -> vector<10x32xf32>
    %c0_13 = arith.constant 0 : index
    %c0_14 = arith.constant 0 : index
    %22 = vector.load %arg4[%c0_13, %c0_14] : memref<1x32xf32, #tpu.memory_space<vmem>>, vector<1x32xf32>
    %23 = vector.broadcast %22 : vector<1x32xf32> to vector<10x32xf32>
    %24 = arith.addf %21, %23 : vector<10x32xf32>
    %c0_15 = arith.constant 0 : index
    %c0_16 = arith.constant 0 : index
    %c0_17 = arith.constant 0 : index
    %25 = vector.load %arg6[%c0_15, %c0_16, %c0_17] : memref<1x10x32xf32, #tpu.memory_space<vmem>>, vector<1x10x32xf32>
    %26 = vector.shape_cast %25 : vector<1x10x32xf32> to vector<10x32xf32>
    %27 = vector.shape_cast %24 : vector<10x32xf32> to vector<1x10x32xf32>
    tpu.vector_store %arg6[%c0_15, %c0_16, %c0_17], %27 {strides = array<i32>} : memref<1x10x32xf32, #tpu.memory_space<vmem>>, vector<1x10x32xf32>,
    return
  }
  func.func @transform_0(%arg0: i32) -> (i32, i32) {
    %c0_i32 = arith.constant 0 : i32
    %c0_i32_0 = arith.constant 0 : i32
    %c0_i32_1 = arith.constant 0 : i32
    return %c0_i32, %c0_i32_0 : i32, i32
  }
  func.func @transform_1(%arg0: i32) -> (i32, i32) {
    %c0_i32 = arith.constant 0 : i32
    %c0_i32_0 = arith.constant 0 : i32
    %c0_i32_1 = arith.constant 0 : i32
    return %c0_i32, %c0_i32_0 : i32, i32
  }
  func.func @transform_2(%arg0: i32) -> (i32, i32) {
    %c0_i32 = arith.constant 0 : i32
    %c0_i32_0 = arith.constant 0 : i32
    %c0_i32_1 = arith.constant 0 : i32
    return %c0_i32, %c0_i32_0 : i32, i32
  }
  func.func @transform_3(%arg0: i32) -> (i32, i32) {
    %c0_i32 = arith.constant 0 : i32
    %c0_i32_0 = arith.constant 0 : i32
    %c0_i32_1 = arith.constant 0 : i32
    return %c0_i32, %c0_i32_0 : i32, i32
  }
  func.func @transform_4(%arg0: i32) -> (i32, i32, i32) {
    %c0_i32 = arith.constant 0 : i32
    %c0_i32_0 = arith.constant 0 : i32
    %c0_i32_1 = arith.constant 0 : i32
    return %arg0, %c0_i32, %c0_i32_0 : i32, i32, i32
  }
  func.func @transform_5(%arg0: i32) -> (i32, i32, i32) {
    %c0_i32 = arith.constant 0 : i32
    %c0_i32_0 = arith.constant 0 : i32
    %c0_i32_1 = arith.constant 0 : i32
    return %arg0, %c0_i32, %c0_i32_0 : i32, i32, i32
  }
}

</mosaic_0001>

<bundles_post_ra>
// kernel: tpu_custom_call.1
= control target key start
LH: loop header
LB: loop body
LE: loop exit
PB: predicated region body
PF: predicated region fallthrough
CT: control target
= control target key end

     0   :  { %s1316_s18 = smov 0   ;;  %s1560_s0 = inlined_call_operand.vmem [shape: f32[32,32], index: 0, kind: input, shape index: {}]   ;;  %s1561_s1 = inlined_call_operand.vmem [shape: f32[32,32], index: 1, kind: input, shape index: {}]   ;;  %s1562_s2 = inlined_call_operand.vmem [shape: f32[32,32], index: 2, kind: input, shape index: {}]   ;;  %s1563_s3 = inlined_call_operand.vmem [shape: f32[1,32], index: 3, kind: input, shape index: {}]   ;;  %s1564_s4 = inlined_call_operand.vmem [shape: f32[2,200,32], index: 4, kind: input, shape index: {}]   ;;  %s1565_s5 = inlined_call_operand.vmem [shape: f32[2,10,32], index: 5, kind: output, shape index: {}]  }
   0x1 LB: > { %s940_s19 = sadd.s32 4294967295, %s1281_s18   ;;  %p944_p0 = scmp.ge.s32.totalorder %s1281_s18, 1  ;;  %s1281_s18 = sphi %s1316_s18, %s15_s18  }
   0x2   : > { %p187_p1 = scmp.lt.s32.totalorder %s1281_s18, 3 }
   0x4   : > { %p188_p2 = pnand %p944_p0, %p187_p1 }
   0x5   : > { %p215_p3 = scmp.lt.s32.totalorder (!%p188_p2), %s940_s19, 1  ;;  %v1283_v0 = vmov (!%p188_p2), 0.0|0.0   ;;  %v1284_v1 = vmov (!%p188_p2), 0.0   ;;  %v488_v2 = vld [vmem:[%s1561_s1] sm:$0xff] (!%p188_p2)  ;;  %v489_v3 = vld [vmem:[%s1561_s1 + $0x8] sm:$0xff] (!%p188_p2)  ;;  %v490_v4 = vld [vmem:[%s1561_s1 + $0x10] sm:$0xff] (!%p188_p2) }
   0x6   : > { %191 = sbr.rel (%p188_p2) target bundleno = 937 (0x3a9), region = 40  ;;  %1141 = vmatprep.subr.bf16.mxu0 (!%p188_p2), %v1283_v0  ;;  %406 = vmatprep.mubr.f32.mxu0 (!%p188_p2), %v1284_v1  ;;  %vm1285_vm0 = vmmov (!%p188_p2), 0   ;;  %v1190_v5 = vpack.c.bf16 (!%p188_p2), %v489_v3, %v488_v2  ;;  %v491_v6 = vld [vmem:[%s1561_s1 + $0x18] sm:$0xff] (!%p188_p2)  ;;  %vm254_vm1 = vcmask (!%p188_p2), 261120   ;;  %v250_v46 = vld [vmem:[%s1560_s0] sm:$0xff] (!%p188_p2)  ;;  %v251_v47 = vld [vmem:[%s1560_s0 + $0x8] sm:$0xff] (!%p188_p2) }
   0x7   : > { %1189 = vmatprep.subr.bf16.mxu1 (!%p188_p2), %v1283_v0  ;;  %1055 = vmatprep.mubr.msk.f32.mxu1 (!%p188_p2), %vm1285_vm0, %v1284_v1  ;;  %v1193_v7 = vpack.c.bf16 (!%p188_p2), %v491_v6, %v490_v4  ;;  %vm1354_vm2 = vmpackc.low (!%p188_p2), %vm254_vm1, %vm254_vm1  ;;  %v252_v48 = vld [vmem:[%s1560_s0 + $0x10] sm:$0xff] (!%p188_p2)  ;;  %v253_v49 = vld [vmem:[%s1560_s0 + $0x18] sm:$0xff] (!%p188_p2)  ;;  %vm431_vm3 = vcmask (!%p188_p2), 588800   ;;  %vm787_vm4 = vcmask (!%p188_p2), 130048   ;;  %vm883_vm5 = vcmask (!%p188_p2), 254976  }
   0x8   : > { %1191 = vmatpush3.bf16.msra.mxu1 (!%p188_p2), %v1190_v5 }
   0x9   : > { %1192 = vmatprep.subr.bf16.mxu1 (!%p188_p2), %v1283_v0 }
   0xc   : > { %1194 = vmatpush3.bf16.msra.mxu1 (!%p188_p2), %v1193_v7 }
   0xd   : > { %s1569_s19 = smov (!%p215_p3, %s940_s19), 1  ;;  %1195 = vmatprep.subr.bf16.mxu1 %v1283_v0 }
   0xe   : > { %s1239_s28 = smul.u32 200, %s1569_s19  ;;  %s1011_s25 = sshll.u32 %s1569_s19, 4 }
   0xf   : > { %s224_s30 = scalar_lea.vmem %s1565_s5, %s1011_s25 }
  0x10   : > { %s1347_s6 = scalar_lea.vmem %s1564_s4, %s1239_s28 }
  0x11   : > { %v225_v8 = vld [vmem:[%s1347_s6] sm:$0xff]  ;;  %v226_v9 = vld [vmem:[%s1347_s6 + $0x8] sm:$0xff]  ;;  %v227_v12 = vld [vmem:[%s1347_s6 + $0x10] sm:$0xff] }
  0x12   : > { %v1142_v11 = vpack.c.bf16 %v226_v9, %v225_v8  ;;  %v228_v13 = vld [vmem:[%s1347_s6 + $0x18] sm:$0xff]  ;;  %1056 = vmatmul.mubr.msk.f32.vlgmr.msra.gmra.mrb[0].mxu1 %vm254_vm1, %v225_v8  ;;  %v229_v15 = vld [vmem:[%s1347_s6 + $0x20] sm:$0xff]  ;;  %v230_v16 = vld [vmem:[%s1347_s6 + $0x28] sm:$0xff] }
  0x13   : > { %1058 = vmatprep.mubr.msk.f32.mxu1 %vm1285_vm0, %v1284_v1  ;;  %v1146_v14 = vpack.c.bf16 %v228_v13, %v227_v12  ;;  %v1150_v17 = vpack.c.bf16 %v230_v16, %v229_v15  ;;  %v231_v18 = vld [vmem:[%s1347_s6 + $0x30] sm:$0xff]  ;;  %v232_v19 = vld [vmem:[%s1347_s6 + $0x38] sm:$0xff]  ;;  %v233_v21 = vld [vmem:[%s1347_s6 + $0x40] sm:$0xff] }
  0x14   : > { %1144 = vmatpush1.bf16.xpose.msk.msra.mxu0 %vm1354_vm2, %v1142_v11  ;;  %v1154_v20 = vpack.c.bf16 %v232_v19, %v231_v18  ;;  %v234_v22 = vld [vmem:[%s1347_s6 + $0x48] sm:$0xff]  ;;  %v235_v24 = vld [vmem:[%s1347_s6 + $0x50] sm:$0xff]  ;;  %v236_v25 = vld [vmem:[%s1347_s6 + $0x58] sm:$0xff] }
  0x15   : > { %1145 = vmatprep.subr.bf16.mxu0 %v1283_v0  ;;  %v1158_v23 = vpack.c.bf16 %v234_v22, %v233_v21  ;;  %v1162_v26 = vpack.c.bf16 %v236_v25, %v235_v24  ;;  %v237_v27 = vld [vmem:[%s1347_s6 + $0x60] sm:$0xff]  ;;  %v238_v28 = vld [vmem:[%s1347_s6 + $0x68] sm:$0xff]  ;;  %v239_v30 = vld [vmem:[%s1347_s6 + $0x70] sm:$0xff] }
  0x16   : > { %1059 = vmatmul.mubr.msk.f32.gmra.mrb[2].mxu1 %vm254_vm1, %v226_v9  ;;  %v1166_v29 = vpack.c.bf16 %v238_v28, %v237_v27  ;;  %v240_v31 = vld [vmem:[%s1347_s6 + $0x78] sm:$0xff]  ;;  %v241_v33 = vld [vmem:[%s1347_s6 + $0x80] sm:$0xff]  ;;  %v242_v34 = vld [vmem:[%s1347_s6 + $0x88] sm:$0xff] }
  0x17   : > { %1061 = vmatprep.mubr.msk.f32.mxu1 %vm1285_vm0, %v1284_v1  ;;  %v1170_v32 = vpack.c.bf16 %v240_v31, %v239_v30  ;;  %v1174_v35 = vpack.c.bf16 %v242_v34, %v241_v33  ;;  %v243_v36 = vld [vmem:[%s1347_s6 + $0x90] sm:$0xff]  ;;  %v244_v37 = vld [vmem:[%s1347_s6 + $0x98] sm:$0xff]  ;;  %v245_v39 = vld [vmem:[%s1347_s6 + $0xa0] sm:$0xff] }
  0x18   : > { %v1178_v38 = vpack.c.bf16 %v244_v37, %v243_v36  ;;  %v246_v40 = vld [vmem:[%s1347_s6 + $0xa8] sm:$0xff]  ;;  %v247_v42 = vld [vmem:[%s1347_s6 + $0xb0] sm:$0xff]  ;;  %v248_v43 = vld [vmem:[%s1347_s6 + $0xb8] sm:$0xff] }
  0x19   : > { %v1182_v41 = vpack.c.bf16 %v246_v40, %v245_v39  ;;  %v1186_v44 = vpack.c.bf16 %v248_v43, %v247_v42  ;;  %v249_v45 = vld [vmem:[%s1347_s6 + $0xc0] sm:$0xff] }
  0x1a   : > { %1062 = vmatmul.mubr.msk.f32.gmra.mrb[4].mxu1 %vm254_vm1, %v227_v12 }
  0x1b   : > { %1064 = vmatprep.mubr.msk.f32.mxu1 %vm1285_vm0, %v1284_v1 }
  0x1c   : > { %1148 = vmatpush1.bf16.xpose.msk.msra.mxu0 %vm1354_vm2, %v1146_v14 }
  0x1d   : > { %1149 = vmatprep.subr.bf16.mxu0 %v1283_v0 }
  0x1e   : > { %1065 = vmatmul.mubr.msk.f32.gmra.mrb[6].mxu1 %vm254_vm1, %v228_v13 }
  0x1f   : > { %1067 = vmatprep.mubr.msk.f32.mxu1 %vm1285_vm0, %v1284_v1 }
  0x22   : > { %1068 = vmatmul.mubr.msk.f32.gmra.mrb[8].mxu1 %vm254_vm1, %v229_v15 }
  0x23   : > { %1070 = vmatprep.mubr.msk.f32.mxu1 %vm1285_vm0, %v1284_v1 }
  0x24   : > { %1152 = vmatpush1.bf16.xpose.msk.msra.mxu0 %vm1354_vm2, %v1150_v17 }
  0x25   : > { %1153 = vmatprep.subr.bf16.mxu0 %v1283_v0 }
  0x26   : > { %1071 = vmatmul.mubr.msk.f32.gmra.mrb[10].mxu1 %vm254_vm1, %v230_v16 }
  0x27   : > { %1073 = vmatprep.mubr.msk.f32.mxu1 %vm1285_vm0, %v1284_v1 }
  0x2a   : > { %1074 = vmatmul.mubr.msk.f32.gmra.mrb[12].mxu1 %vm254_vm1, %v231_v18 }
  0x2b   : > { %1076 = vmatprep.mubr.msk.f32.mxu1 %vm1285_vm0, %v1284_v1 }
  0x2c   : > { %1156 = vmatpush1.bf16.xpose.msk.msra.mxu0 %vm1354_vm2, %v1154_v20 }
  0x2d   : > { %1157 = vmatprep.subr.bf16.mxu0 %v1283_v0 }
  0x2e   : > { %1077 = vmatmul.mubr.msk.f32.gmra.mrb[14].mxu1 %vm254_vm1, %v232_v19 }
  0x2f   : > { %1079 = vmatprep.mubr.msk.f32.mxu1 %vm1285_vm0, %v1284_v1 }
  0x32   : > { %1080 = vmatmul.mubr.msk.f32.gmra.mrb[16].mxu1 %vm254_vm1, %v233_v21 }
  0x33   : > { %1082 = vmatprep.mubr.msk.f32.mxu1 %vm1285_vm0, %v1284_v1 }
  0x34   : > { %1160 = vmatpush1.bf16.xpose.msk.msra.mxu0 %vm1354_vm2, %v1158_v23 }
  0x35   : > { %1161 = vmatprep.subr.bf16.mxu0 %v1283_v0 }
  0x36   : > { %1083 = vmatmul.mubr.msk.f32.gmra.mrb[18].mxu1 %vm254_vm1, %v234_v22 }
  0x37   : > { %1085 = vmatprep.mubr.msk.f32.mxu1 %vm1285_vm0, %v1284_v1 }
  0x3a   : > { %1086 = vmatmul.mubr.msk.f32.gmra.mrb[20].mxu1 %vm254_vm1, %v235_v24 }
  0x3b   : > { %1088 = vmatprep.mubr.msk.f32.mxu1 %vm1285_vm0, %v1284_v1 }
  0x3c   : > { %1164 = vmatpush1.bf16.xpose.msk.msra.mxu0 %vm1354_vm2, %v1162_v26 }
  0x3d   : > { %1165 = vmatprep.subr.bf16.mxu0 %v1283_v0 }
  0x3e   : > { %1089 = vmatmul.mubr.msk.f32.gmra.mrb[22].mxu1 %vm254_vm1, %v236_v25 }
  0x3f   : > { %1091 = vmatprep.mubr.msk.f32.mxu1 %vm1285_vm0, %v1284_v1 }
  0x42   : > { %1092 = vmatmul.mubr.msk.f32.gmra.mrb[24].mxu1 %vm254_vm1, %v237_v27 }
  0x43   : > { %1094 = vmatprep.mubr.msk.f32.mxu1 %vm1285_vm0, %v1284_v1 }
  0x44   : > { %1168 = vmatpush1.bf16.xpose.msk.msra.mxu0 %vm1354_vm2, %v1166_v29 }
  0x45   : > { %1169 = vmatprep.subr.bf16.mxu0 %v1283_v0 }
  0x46   : > { %1095 = vmatmul.mubr.msk.f32.gmra.mrb[26].mxu1 %vm254_vm1, %v238_v28 }
  0x47   : > { %1097 = vmatprep.mubr.msk.f32.mxu1 %vm1285_vm0, %v1284_v1 }
  0x4a   : > { %1098 = vmatmul.mubr.msk.f32.gmra.mrb[28].mxu1 %vm254_vm1, %v239_v30 }
  0x4b   : > { %1100 = vmatprep.mubr.msk.f32.mxu1 %vm1285_vm0, %v1284_v1 }
  0x4c   : > { %1172 = vmatpush1.bf16.xpose.msk.msra.mxu0 %vm1354_vm2, %v1170_v32 }
  0x4d   : > { %1173 = vmatprep.subr.bf16.mxu0 %v1283_v0 }
  0x4e   : > { %1101 = vmatmul.mubr.msk.f32.gmra.mrb[30].mxu1 %vm254_vm1, %v240_v31 }
  0x4f   : > { %1103 = vmatprep.mubr.msk.f32.mxu1 %vm1285_vm0, %v1284_v1 }
  0x52   : > { %1104 = vmatmul.mubr.msk.f32.gmra.mrb[32].mxu1 %vm254_vm1, %v241_v33 }
  0x53   : > { %1106 = vmatprep.mubr.msk.f32.mxu1 %vm1285_vm0, %v1284_v1 }
  0x54   : > { %1176 = vmatpush1.bf16.xpose.msk.msra.mxu0 %vm1354_vm2, %v1174_v35 }
  0x55   : > { %1177 = vmatprep.subr.bf16.mxu0 %v1283_v0 }
  0x56   : > { %1107 = vmatmul.mubr.msk.f32.gmra.mrb[34].mxu1 %vm254_vm1, %v242_v34 }
  0x57   : > { %1109 = vmatprep.mubr.msk.f32.mxu1 %vm1285_vm0, %v1284_v1 }
  0x5a   : > { %1110 = vmatmul.mubr.msk.f32.gmra.mrb[36].mxu1 %vm254_vm1, %v243_v36 }
  0x5b   : > { %1112 = vmatprep.mubr.msk.f32.mxu1 %vm1285_vm0, %v1284_v1 }
  0x5c   : > { %1180 = vmatpush1.bf16.xpose.msk.msra.mxu0 %vm1354_vm2, %v1178_v38 }
  0x5d   : > { %1181 = vmatprep.subr.bf16.mxu0 %v1283_v0 }
  0x5e   : > { %1113 = vmatmul.mubr.msk.f32.gmra.mrb[38].mxu1 %vm254_vm1, %v244_v37 }
  0x5f   : > { %1115 = vmatprep.mubr.msk.f32.mxu1 %vm1285_vm0, %v1284_v1 }
  0x62   : > { %1116 = vmatmul.mubr.msk.f32.gmra.mrb[40].mxu1 %vm254_vm1, %v245_v39 }
  0x63   : > { %1118 = vmatprep.mubr.msk.f32.mxu1 %vm1285_vm0, %v1284_v1 }
  0x64   : > { %1184 = vmatpush1.bf16.xpose.msk.msra.mxu0 %vm1354_vm2, %v1182_v41 }
  0x65   : > { %1185 = vmatprep.subr.bf16.mxu0 %v1283_v0 }
  0x66   : > { %1119 = vmatmul.mubr.msk.f32.gmra.mrb[42].mxu1 %vm254_vm1, %v246_v40 }
  0x67   : > { %1121 = vmatprep.mubr.msk.f32.mxu1 %vm1285_vm0, %v1284_v1 }
  0x6a   : > { %1122 = vmatmul.mubr.msk.f32.gmra.mrb[44].mxu1 %vm254_vm1, %v247_v42 }
  0x6b   : > { %1124 = vmatprep.mubr.msk.f32.mxu1 %vm1285_vm0, %v1284_v1 }
  0x6c   : > { %1188 = vmatpush1.bf16.xpose.msk.msra.mxu0 %vm1354_vm2, %v1186_v44 }
  0x6d   : > { %390 = vmatprep.subr.mxu0 %v1284_v1 }
  0x6e   : > { %1125 = vmatmul.mubr.msk.f32.gmra.mrb[46].mxu1 %vm254_vm1, %v248_v43 }
  0x6f   : > { %1127 = vmatprep.mubr.msk.f32.mxu1 %vm1285_vm0, %v1284_v1 }
  0x72   : > { %1128 = vmatmul.mubr.msk.f32.gmra.mrb[48].mxu1 %vm254_vm1, %v249_v45 }
  0x74   : > { %972 = vmatpush1.xpose.msk.msra.mxu0 %vm254_vm1, %v249_v45 }
  0x77   : > { %973 = vmatmul.mubr.msk.f32.vlgmr.msra.gmra.mrb[0].mxu0 %vm254_vm1, %v250_v46 }
  0x78   : > { %412 = vmatprep.mubr.f32.mxu0 %v1284_v1 }
  0x7b   : > { %974 = vmatmul.mubr.msk.f32.gmra.mrb[2].mxu0 %vm254_vm1, %v251_v47 }
  0x7c   : > { %418 = vmatprep.mubr.f32.mxu0 %v1284_v1 }
  0x7f   : > { %975 = vmatmul.mubr.msk.f32.gmra.mrb[4].mxu0 %vm254_vm1, %v252_v48 }
  0x80   : > { %424 = vmatprep.mubr.f32.mxu0 %v1284_v1 }
  0x83   : > { %976 = vmatmul.mubr.msk.f32.gmra.mrb[6].mxu0 %vm254_vm1, %v253_v49 }
  0xe5   : > { %v558_v50 = vpop.f32.mrb[0].mxu1 }
  0xe6   : > { %v1057_v51 = vpop.f32.mrb[1].mxu1 }
  0xe9   : > { %v563_v52 = vpop.f32.mrb[2].mxu1 }
  0xea   : > { %v1196_v53 = vpack.c.bf16 %v563_v52, %v558_v50  ;;  %v1060_v54 = vpop.f32.mrb[3].mxu1 }
  0xec   : > { %1197 = vmatpush1.bf16.msra.mxu1 %v1196_v53 }
  0xed   : > { %v568_v55 = vpop.f32.mrb[4].mxu1  ;;  %1198 = vmatprep.subr.bf16.mxu1 %v1283_v0 }
  0xee   : > { %v1063_v56 = vpop.f32.mrb[5].mxu1 }
  0xf1   : > { %v573_v57 = vpop.f32.mrb[6].mxu1 }
  0xf2   : > { %v1199_v58 = vpack.c.bf16 %v573_v57, %v568_v55  ;;  %v1066_v59 = vpop.f32.mrb[7].mxu1 }
  0xf4   : > { %1200 = vmatpush1.bf16.msra.mxu1 %v1199_v58 }
  0xf5   : > { %v578_v60 = vpop.f32.mrb[8].mxu1  ;;  %1201 = vmatprep.subr.bf16.mxu1 %v1283_v0 }
  0xf6   : > { %v1069_v61 = vpop.f32.mrb[9].mxu1 }
  0xf9   : > { %v583_v62 = vpop.f32.mrb[10].mxu1 }
  0xfa   : > { %v1202_v63 = vpack.c.bf16 %v583_v62, %v578_v60  ;;  %v1072_v2 = vpop.f32.mrb[11].mxu1 }
  0xfc   : > { %1203 = vmatpush1.bf16.msra.mxu1 %v1202_v63 }
  0xfd   : > { %v588_v3 = vpop.f32.mrb[12].mxu1  ;;  %1204 = vmatprep.subr.bf16.mxu1 %v1283_v0 }
  0xfe   : > { %v1075_v4 = vpop.f32.mrb[13].mxu1 }
 0x101   : > { %v593_v5 = vpop.f32.mrb[14].mxu1 }
 0x102   : > { %v1205_v6 = vpack.c.bf16 %v593_v5, %v588_v3  ;;  %v1078_v7 = vpop.f32.mrb[15].mxu1 }
 0x104   : > { %1206 = vmatpush1.bf16.msra.mxu1 %v1205_v6 }
 0x105   : > { %v598_v8 = vpop.f32.mrb[16].mxu1  ;;  %1207 = vmatprep.subr.bf16.mxu1 %v1283_v0 }
 0x106   : > { %v1081_v9 = vpop.f32.mrb[17].mxu1 }
 0x109   : > { %v603_v10 = vpop.f32.mrb[18].mxu1 }
 0x10a   : > { %v1208_v11 = vpack.c.bf16 %v603_v10, %v598_v8  ;;  %v1084_v12 = vpop.f32.mrb[19].mxu1 }
 0x10c   : > { %1209 = vmatpush1.bf16.msra.mxu1 %v1208_v11 }
 0x10d   : > { %v608_v13 = vpop.f32.mrb[20].mxu1  ;;  %1210 = vmatprep.subr.bf16.mxu1 %v1283_v0 }
 0x10e   : > { %v1087_v14 = vpop.f32.mrb[21].mxu1 }
 0x111   : > { %v613_v15 = vpop.f32.mrb[22].mxu1 }
 0x112   : > { %v1211_v16 = vpack.c.bf16 %v613_v15, %v608_v13  ;;  %v1090_v17 = vpop.f32.mrb[23].mxu1 }
 0x114   : > { %1212 = vmatpush1.bf16.msra.mxu1 %v1211_v16 }
 0x115   : > { %v618_v18 = vpop.f32.mrb[24].mxu1  ;;  %1213 = vmatprep.subr.bf16.mxu1 %v1283_v0 }
 0x116   : > { %v1093_v19 = vpop.f32.mrb[25].mxu1 }
 0x119   : > { %v623_v20 = vpop.f32.mrb[26].mxu1 }
 0x11a   : > { %v1214_v21 = vpack.c.bf16 %v623_v20, %v618_v18  ;;  %v1096_v22 = vpop.f32.mrb[27].mxu1 }
 0x11c   : > { %1215 = vmatpush1.bf16.msra.mxu1 %v1214_v21 }
 0x11d   : > { %v628_v23 = vpop.f32.mrb[28].mxu1  ;;  %1216 = vmatprep.subr.bf16.mxu1 %v1283_v0 }
 0x11e   : > { %v1099_v24 = vpop.f32.mrb[29].mxu1 }
 0x121   : > { %v633_v25 = vpop.f32.mrb[30].mxu1 }
 0x122   : > { %v1217_v26 = vpack.c.bf16 %v633_v25, %v628_v23  ;;  %v1102_v27 = vpop.f32.mrb[31].mxu1 }
 0x124   : > { %1218 = vmatpush1.bf16.msra.mxu1 %v1217_v26 }
 0x125   : > { %v638_v28 = vpop.f32.mrb[32].mxu1  ;;  %1219 = vmatprep.subr.bf16.mxu1 %v1283_v0 }
 0x126   : > { %v1105_v29 = vpop.f32.mrb[33].mxu1 }
 0x129   : > { %v643_v30 = vpop.f32.mrb[34].mxu1 }
 0x12a   : > { %v1220_v31 = vpack.c.bf16 %v643_v30, %v638_v28  ;;  %v1108_v32 = vpop.f32.mrb[35].mxu1 }
 0x12c   : > { %1221 = vmatpush1.bf16.msra.mxu1 %v1220_v31 }
 0x12d   : > { %v648_v33 = vpop.f32.mrb[36].mxu1  ;;  %1222 = vmatprep.subr.bf16.mxu1 %v1283_v0 }
 0x12e   : > { %v1111_v34 = vpop.f32.mrb[37].mxu1 }
 0x131   : > { %v653_v35 = vpop.f32.mrb[38].mxu1 }
 0x132   : > { %v1223_v36 = vpack.c.bf16 %v653_v35, %v648_v33  ;;  %v1114_v37 = vpop.f32.mrb[39].mxu1 }
 0x134   : > { %1224 = vmatpush1.bf16.msra.mxu1 %v1223_v36 }
 0x135   : > { %v658_v38 = vpop.f32.mrb[40].mxu1  ;;  %1225 = vmatprep.subr.bf16.mxu1 %v1283_v0 }
 0x136   : > { %v1117_v39 = vpop.f32.mrb[41].mxu1 }
 0x137   : > { %v791_v39 = vld [vmem:[%s1562_s2 + $0x8] sm:$0xff] }
 0x139   : > { %v663_v40 = vpop.f32.mrb[42].mxu1 }
 0x13a   : > { %v1226_v41 = vpack.c.bf16 %v663_v40, %v658_v38  ;;  %v1120_v42 = vpop.f32.mrb[43].mxu1  ;;  %v790_v38 = vld [vmem:[%s1562_s2] sm:$0xff] }
 0x13b   : > { %v1231_v40 = vpack.c.bf16 %v791_v39, %v790_v38  ;;  %v793_v42 = vld [vmem:[%s1562_s2 + $0x18] sm:$0xff] }
 0x13c   : > { %1227 = vmatpush1.bf16.msra.mxu1 %v1226_v41  ;;  %v792_v41 = vld [vmem:[%s1562_s2 + $0x10] sm:$0xff] }
 0x13d   : > { %v668_v43 = vpop.f32.mrb[44].mxu1  ;;  %1228 = vmatprep.subr.bf16.mxu1 %v1283_v0  ;;  %1232 = vmatprep.subr.bf16.mxu0 %v1231_v40 }
 0x13e   : > { %v1123_v44 = vpop.f32.mrb[45].mxu1  ;;  %1234 = vmatpush3.bf16.msra.mxu0 %v1231_v40 }
 0x141   : > { %v673_v45 = vpop.f32.mrb[46].mxu1 }
 0x142   : > { %v1229_v46 = vpack.c.bf16 %v673_v45, %v668_v43  ;;  %v1126_v47 = vpop.f32.mrb[47].mxu1  ;;  %v1235_v43 = vpack.c.bf16 %v793_v42, %v792_v41 }
 0x144   : > { %1230 = vmatpush1.bf16.msra.mxu1 %v1229_v46  ;;  %1236 = vmatprep.subr.bf16.mxu0 %v1235_v43 }
 0x145   : > { %742 = vmatprep.subr.mxu1 %v1284_v1  ;;  %v678_v62 = vpop.f32.mrb[48].mxu1  ;;  %1238 = vmatpush3.bf16.msra.mxu0 %v1235_v43 }
 0x146   : > { %v1129_v63 = vpop.f32.mrb[49].mxu1 }
 0x148   : > { %743 = vmatpush1.msra.mxu1 %v678_v62 }
 0x14a   : > { %v408_v48 = vpop.f32.mrb[0].mxu0 }
 0x14b   : > { %v410_v49 = vpop.f32.mrb[1].mxu0 }
 0x14c   : > { %v432_v50 = vsel %vm431_vm3, %v410_v49, -inf }
 0x14d   : > { %v433_v51 = vmax.f32 %v408_v48, %v432_v50 }
 0x14e   : > { %v414_v52 = vpop.f32.mrb[2].mxu0 }
 0x14f   : > { %434 = vmax.xlane.f32.xlu0 %v433_v51  ;;  %v416_v53 = vpop.f32.mrb[3].mxu0 }
 0x150   : > { %v436_v54 = vsel %vm431_vm3, %v416_v53, -inf }
 0x151   : > { %v437_v55 = vmax.f32 %v414_v52, %v436_v54 }
 0x152   : > { %v420_v0 = vpop.f32.mrb[4].mxu0 }
 0x153   : > { %438 = vmax.xlane.f32.xlu0 %v437_v55  ;;  %v422_v56 = vpop.f32.mrb[5].mxu0 }
 0x154   : > { %v440_v57 = vsel %vm431_vm3, %v422_v56, -inf }
 0x155   : > { %v441_v58 = vmax.f32 %v420_v0, %v440_v57 }
 0x156   : > { %v426_v59 = vpop.f32.mrb[6].mxu0 }
 0x157   : > { %442 = vmax.xlane.f32.xlu1 %v441_v58  ;;  %v428_v1 = vpop.f32.mrb[7].mxu0 }
 0x158   : > { %v444_v60 = vsel %vm431_vm3, %v428_v1, -inf }
 0x159   : > { %v445_v61 = vmax.f32 %v426_v59, %v444_v60 }
 0x15b   : > { %446 = vmax.xlane.f32.xlu1 %v445_v61 }
 0x1dc   : > { %v435_v2 = vpop.xlane.xlu0 %434 }
 0x1dd   : > { %v448_v3 = vsub.f32 %v408_v48, %v435_v2  ;;  %v449_v4 = vsub.f32 %v410_v49, %v435_v2  ;;  %v1006_v2 = vld [vmem:[%s1563_s3] ss:$0 sm:$0xff] }
 0x1df   : > { %v456_v5 = vmul.f32 1.442695, %v448_v3  ;;  %v458_v6 = vmul.f32 1.442695, %v449_v4 }
 0x1e0   : > { %v439_v7 = vpop.xlane.xlu0 %438 }
 0x1e1   : > { %1251 = vpow2.f32 %v456_v5  ;;  %v450_v8 = vsub.f32 %v414_v52, %v439_v7  ;;  %v451_v9 = vsub.f32 %v416_v53, %v439_v7 }
 0x1e2   : > { %1253 = vpow2.f32 %v458_v6 }
 0x1e3   : > { %v460_v10 = vmul.f32 1.442695, %v450_v8  ;;  %v462_v11 = vmul.f32 1.442695, %v451_v9 }
 0x1e4   : > { %v443_v12 = vpop.xlane.xlu1 %442 }
 0x1e5   : > { %1255 = vpow2.f32 %v460_v10  ;;  %v452_v13 = vsub.f32 %v420_v0, %v443_v12  ;;  %v453_v14 = vsub.f32 %v422_v56, %v443_v12 }
 0x1e6   : > { %1257 = vpow2.f32 %v462_v11 }
 0x1e7   : > { %v464_v15 = vmul.f32 1.442695, %v452_v13  ;;  %v466_v16 = vmul.f32 1.442695, %v453_v14 }
 0x1e8   : > { %v447_v17 = vpop.xlane.xlu1 %446 }
 0x1e9   : > { %1259 = vpow2.f32 %v464_v15  ;;  %v454_v18 = vsub.f32 %v426_v59, %v447_v17  ;;  %v455_v19 = vsub.f32 %v428_v1, %v447_v17 }
 0x1ea   : > { %1261 = vpow2.f32 %v466_v16 }
 0x1eb   : > { %v1252_v20 = vpop.eup %1251  ;;  %v468_v21 = vmul.f32 1.442695, %v454_v18  ;;  %v470_v22 = vmul.f32 1.442695, %v455_v19 }
 0x1ec   : > { %v1254_v23 = vpop.eup %1253 }
 0x1ed   : > { %1263 = vpow2.f32 %v468_v21  ;;  %1002 = vmatprep.mubr.msk.f32.mxu1 %vm431_vm3, %v1254_v23  ;;  %v472_v24 = vsel %vm431_vm3, %v1254_v23, 0.0 }
 0x1ee   : > { %1265 = vpow2.f32 %v470_v22  ;;  %759 = vmatmul.mubr.f32.vlgmr.msra.gmra.mrb[50].mxu1 %v1252_v20  ;;  %v473_v25 = vadd.f32 %v1252_v20, %v472_v24 }
 0x1ef   : > { %v1256_v26 = vpop.eup %1255 }
 0x1f0   : > { %v1258_v27 = vpop.eup %1257  ;;  %474 = vadd.xlane.f32.xlu0 %v473_v25 }
 0x1f1   : > { %1003 = vmatprep.mubr.msk.f32.mxu1 %vm431_vm3, %v1258_v27  ;;  %v476_v28 = vsel %vm431_vm3, %v1258_v27, 0.0 }
 0x1f2   : > { %764 = vmatmul.mubr.f32.gmra.mrb[52].mxu1 %v1256_v26  ;;  %v477_v29 = vadd.f32 %v1256_v26, %v476_v28 }
 0x1f3   : > { %v1260_v30 = vpop.eup %1259 }
 0x1f4   : > { %v1262_v31 = vpop.eup %1261  ;;  %478 = vadd.xlane.f32.xlu0 %v477_v29 }
 0x1f5   : > { %1004 = vmatprep.mubr.msk.f32.mxu1 %vm431_vm3, %v1262_v31  ;;  %v480_v32 = vsel %vm431_vm3, %v1262_v31, 0.0 }
 0x1f6   : > { %769 = vmatmul.mubr.f32.gmra.mrb[54].mxu1 %v1260_v30  ;;  %v481_v33 = vadd.f32 %v1260_v30, %v480_v32 }
 0x1f7   : > { %v1264_v34 = vpop.eup %1263 }
 0x1f8   : > { %v1266_v35 = vpop.eup %1265  ;;  %482 = vadd.xlane.f32.xlu1 %v481_v33 }
 0x1f9   : > { %1005 = vmatprep.mubr.msk.f32.mxu1 %vm431_vm3, %v1266_v35  ;;  %v484_v36 = vsel %vm431_vm3, %v1266_v35, 0.0 }
 0x1fa   : > { %774 = vmatmul.mubr.f32.gmra.mrb[56].mxu1 %v1264_v34  ;;  %v485_v37 = vadd.f32 %v1264_v34, %v484_v36 }
 0x1fc   : > { %486 = vadd.xlane.f32.xlu1 %v485_v37 }
 0x27d   : > { %v475_v44 = vpop.xlane.xlu0 %474 }
 0x27e   : > { %1267 = vrcp.f32 %v475_v44 }
 0x281   : > { %v479_v46 = vpop.xlane.xlu0 %478 }
 0x285   : > { %v483_v45 = vpop.xlane.xlu1 %482 }
 0x286   : > { %1269 = vrcp.f32 %v483_v45 }
 0x287   : > { %1271 = vrcp.f32 %v479_v46 }
 0x288   : > { %v1268_v52 = vpop.eup %1267 }
 0x289   : > { %v487_v47 = vpop.xlane.xlu1 %486 }
 0x28a   : > { %1273 = vrcp.f32 %v487_v47 }
 0x290   : > { %v1270_v53 = vpop.eup %1269 }
 0x291   : > { %v1272_v57 = vpop.eup %1271 }
 0x294   : > { %v1274_v59 = vpop.eup %1273 }
 0x2c1   : > { %v760_v48 = vpop.f32.mrb[50].mxu1 }
 0x2c2   : > { %v762_v49 = vpop.f32.mrb[51].mxu1  ;;  %v783_v55 = vmul.f32 %v1268_v52, %v760_v48 }
 0x2c5   : > { %v765_v50 = vpop.f32.mrb[52].mxu1 }
 0x2c6   : > { %v767_v51 = vpop.f32.mrb[53].mxu1  ;;  %v784_v60 = vmul.f32 %v1272_v57, %v765_v50 }
 0x2c9   : > { %v770_v54 = vpop.f32.mrb[54].mxu1 }
 0x2ca   : > { %v785_v0 = vmul.f32 %v1270_v53, %v770_v54  ;;  %v772_v56 = vpop.f32.mrb[55].mxu1 }
 0x2cc   : > { %v788_v58 = vsel %vm787_vm4, %v783_v55, %v785_v0 }
 0x2cd   : > { %v775_v1 = vpop.f32.mrb[56].mxu1  ;;  %1138 = vmatprep.mubr.msk.f32.mxu0 %vm254_vm1, %v788_v58 }
 0x2ce   : > { %v786_v61 = vmul.f32 %v1274_v59, %v775_v1  ;;  %v777_v62 = vpop.f32.mrb[57].mxu1 }
 0x2d0   : > { %v789_v63 = vsel %vm787_vm4, %v784_v60, %v786_v61 }
 0x2d1   : > { %1139 = vmatmul.mubr.msk.f32.vlgmr.msra.gmra.mrb[8].mxu0 %vm254_vm1, %v789_v63 }
 0x3a4   : > { %v1140_v3 = vpop.f32.mrb[8].mxu0 }
 0x3a5   : > { %v879_v4 = vadd.f32 %v1140_v3, %v1006_v2  ;;  %v873_v5 = vpop.f32.mrb[9].mxu0 }
 0x3a6   : > { %v874_v6 = vadd.f32 %v1006_v2, %v873_v5 }
 0x3a7   : > { %884 = vst.msk [vmem:[%s224_s30 + $0x8] sm:$0x3] %vm883_vm5, %v879_v4 }
 0x3a8   : > { %882 = vst.msk [vmem:[%s224_s30] sm:$0xff] %vm254_vm1, %v874_v6 }
 0x3a9 PF: > { %s15_s18 = sadd.s32 1, %s1281_s18  }
 0x3aa   : > { %p12_p4 = scmp.ge.s32.totalorder %s15_s18, 4  }
 0x3ac   :  { %14 = sbr.rel (!%p12_p4) target bundleno = 1 (0x1), region = 70 }

</bundles_post_ra>
